<compile_context>
chip_gen: v7x
topology: tpu7x:2x2x1
jax: 0.10.0
libtpu: 0.0.40
codegen_flags: <defaults>
</compile_context>

<pallas_src>
import jax
import jax.numpy as jnp
from jax.experimental import pallas as pl
from jax.experimental.pallas import tpu as pltpu

LANE = 128          # TPU lane width
TB_TARGET = 512     # max batch-tile rows
NEG_BIG = -1e30     # finite "minus infinity" baked into padded b2 lanes

# Feature-detect single-buffering for constant blocks (index_map always (0,0)).
try:
    _BUFFERED_ONE = pl.Buffered(1)
except Exception:  # pragma: no cover - older jax without pipeline_mode support
    _BUFFERED_ONE = None


def _round_up(x, m):
    return (x + m - 1) // m * m


def _pad_feature(d):
    # 256-granular padding once the real dim is >=256 (full 256-wide MXU pass on
    # v6e/v7x); one lane-width (128) otherwise. v5e's 4x128x128 MXU is fine at 128.
    g = 256 if d >= 256 else LANE
    return _round_up(d, g)


def _const_spec(shape):
    """BlockSpec for a VMEM-resident constant block (same block every step)."""
    idx = lambda i: (0,) * len(shape)
    if _BUFFERED_ONE is not None:
        try:
            return pl.BlockSpec(shape, idx, pipeline_mode=_BUFFERED_ONE)
        except TypeError:
            pass
    return pl.BlockSpec(shape, idx)


def ffn_kernel(x_ref, w1_ref, b1_ref, w2_ref, b2_ref, o_ref):
    # x_ref: (TB, Dp) bf16 | w1_ref: (Dp, Hp) bf16 | b1_ref: (1, Hp) f32
    # w2_ref: (Hp, Hp) bf16 | b2_ref: (1, Hp) f32  | o_ref: (TB, Hp) out_dtype
    x = x_ref[...]

    # fc1 + ReLU: bf16 MXU matmul, f32 accumulation; elementwise in f32.
    h = jnp.dot(x, w1_ref[...], preferred_element_type=jnp.float32) + b1_ref[...]
    h = jnp.maximum(h, 0.0)

    # fc2 (feed bf16 back into the MXU, accumulate in f32). Padded output lanes
    # pick up the -1e30 baked into b2 and vanish under exp() below.
    z = jnp.dot(h.astype(w2_ref.dtype), w2_ref[...],
                preferred_element_type=jnp.float32) + b2_ref[...]

    # Numerically stable softmax over the feature (lane) axis.
    z = z - jnp.max(z, axis=-1, keepdims=True)
    e = jnp.exp(z)
    denom = jnp.sum(e, axis=-1, keepdims=True)
    # EUP approximate reciprocal + one Newton refinement: rows sum to 1 to ~f32
    # accuracy while the reciprocal stays on the (otherwise idle) EUP slot.
    r = pl.reciprocal(denom, approx=True)
    r = r * (2.0 - denom * r)
    o_ref[...] = (e * r).astype(o_ref.dtype)


def prepare_params(w1, b1, w2, b2, *, compute_dtype=jnp.bfloat16):
    """One-time parameter prep: transpose to [in, out], zero-pad feature dims,
    cast matmul operands to bf16, and bake the softmax padding mask into b2."""
    H, D_in = w1.shape
    Dp, Hp = _pad_feature(D_in), _pad_feature(H)

    w1_p = jnp.zeros((Dp, Hp), compute_dtype)
    w1_p = w1_p.at[:D_in, :H].set(jnp.asarray(w1, jnp.float32).T.astype(compute_dtype))
    w2_p = jnp.zeros((Hp, Hp), compute_dtype)
    w2_p = w2_p.at[:H, :H].set(jnp.asarray(w2, jnp.float32).T.astype(compute_dtype))
    b1_p = jnp.zeros((1, Hp), jnp.float32).at[0, :H].set(jnp.asarray(b1, jnp.float32))
    # Padded fc2 output lanes get a large finite negative bias -> exp() == 0,
    # so no in-kernel iota/where mask is needed.
    b2_p = jnp.full((1, Hp), NEG_BIG, jnp.float32)
    b2_p = b2_p.at[0, :H].set(jnp.asarray(b2, jnp.float32))
    return w1_p, b1_p, w2_p, b2_p, H


def _ffn_call(x_p, w1_p, b1_p, w2_p, b2_p, tb, out_dtype):
    Bp, Dp = x_p.shape
    Hp = w1_p.shape[1]
    grid = (Bp // tb,)

    out_isize = jnp.dtype(out_dtype).itemsize
    w_isize = jnp.dtype(w1_p.dtype).itemsize
    x_isize = jnp.dtype(x_p.dtype).itemsize

    # VMEM footprint: resident weights/biases (x1 if single-buffered, else x2)
    # plus double-buffered streamed x / out tiles; 2x margin, clamped to a range
    # that is safe on every generation (v7x caps at 64 MiB physical anyway).
    weight_bufs = 1 if _BUFFERED_ONE is not None else 2
    resident = ((w1_p.size + w2_p.size) * w_isize
                + (b1_p.size + b2_p.size) * 4) * weight_bufs
    streamed = 2 * (tb * Dp * x_isize + tb * Hp * out_isize)
    vmem_limit = int(min(max(2 * (resident + streamed) + (4 << 20), 32 << 20),
                         100 << 20))

    flops = 2 * Bp * (Dp * Hp + Hp * Hp)
    bytes_accessed = (x_p.size * x_isize
                      + (w1_p.size + w2_p.size) * w_isize
                      + (b1_p.size + b2_p.size) * 4
                      + Bp * Hp * out_isize)

    return pl.pallas_call(
        ffn_kernel,
        out_shape=jax.ShapeDtypeStruct((Bp, Hp), out_dtype),
        grid=grid,
        in_specs=[
            pl.BlockSpec((tb, Dp), lambda i: (i, 0)),   # x: tiled over batch
            _const_spec((Dp, Hp)),                      # w1: VMEM-resident
            _const_spec((1, Hp)),                       # b1: VMEM-resident
            _const_spec((Hp, Hp)),                      # w2: VMEM-resident
            _const_spec((1, Hp)),                       # b2: VMEM-resident (mask baked in)
        ],
        out_specs=pl.BlockSpec((tb, Hp), lambda i: (i, 0)),
        compiler_params=pltpu.CompilerParams(
            # Batch tiles are independent -> megacore sharding on v7x;
            # harmless on single-TC v5e/v6e.
            dimension_semantics=("parallel",),
            vmem_limit_bytes=vmem_limit,
        ),
        cost_estimate=pl.CostEstimate(
            flops=flops,
            transcendentals=Bp * Hp + Bp,
            bytes_accessed=bytes_accessed,
        ),
    )(x_p, w1_p, b1_p, w2_p, b2_p)


def feedforward(x, w1, b1, w2, b2, *, out_dtype=jnp.float32):
    """x: (B, D_in); w1: (H, D_in); b1: (H,); w2: (H, H); b2: (H,) — PyTorch layout."""
    B, D_in = x.shape
    w1_p, b1_p, w2_p, b2_p, H = prepare_params(w1, b1, w2, b2)
    Dp = w1_p.shape[0]

    # Pick the batch tile: >=16 rows (bf16 sublane packing), capped at TB_TARGET,
    # and split into at least 2 tiles whenever the batch allows so the "parallel"
    # grid axis can shard across both v7x TensorCores.
    B_pad = _round_up(B, 16)
    if B_pad >= 32:
        tb = min(TB_TARGET, max(16, _round_up(B_pad // 2, 16)))
    else:
        tb = B_pad
    B_pad = _round_up(B_pad, tb)

    x_p = jnp.zeros((B_pad, Dp), jnp.bfloat16)
    x_p = x_p.at[:B, :D_in].set(jnp.asarray(x, jnp.float32).astype(jnp.bfloat16))

    out_p = _ffn_call(x_p, w1_p, b1_p, w2_p, b2_p, tb, out_dtype)
    return out_p[:B, :H]


if __name__ == "__main__":
    # Small shapes consistent with the module: batch=8, input_size=16, hidden_size=32
    B, D_IN, HID = 8, 16, 32

    key = jax.random.PRNGKey(0)
    kx, k1, k2, k3, k4 = jax.random.split(key, 5)

    x = jax.random.normal(kx, (B, D_IN), dtype=jnp.float32)

    # Deterministic parameter init (PyTorch Linear-style uniform bounds).
    bound1 = 1.0 / (D_IN ** 0.5)
    w1 = jax.random.uniform(k1, (HID, D_IN), jnp.float32, -bound1, bound1)
    b1 = jax.random.uniform(k2, (HID,), jnp.float32, -bound1, bound1)
    bound2 = 1.0 / (HID ** 0.5)
    w2 = jax.random.uniform(k3, (HID, HID), jnp.float32, -bound2, bound2)
    b2 = jax.random.uniform(k4, (HID,), jnp.float32, -bound2, bound2)

    out = jax.block_until_ready(feedforward(x, w1, b1, w2, b2))

    # Pure-JAX f32 reference; tolerance relaxed for bf16 matmul inputs (by design).
    h_ref = jnp.maximum(x @ w1.T + b1, 0.0)
    z_ref = h_ref @ w2.T + b2
    ref = jax.nn.softmax(z_ref, axis=-1)
    assert out.shape == ref.shape, "shape mismatch vs reference"
    assert jnp.allclose(out, ref, atol=1e-2, rtol=1e-2), "mismatch vs reference"
    assert jnp.allclose(jnp.sum(out, axis=-1), 1.0, atol=1e-3), "softmax rows must sum to 1"

    print("KERNEL_OK")
</pallas_src>

<mosaic_0001>
module attributes {stable_mosaic.version = 11 : i64} {
  func.func @ffn_kernel(%arg0: i32, %arg1: memref<16x128xbf16, #tpu.memory_space<vmem>>, %arg2: memref<128x128xbf16, #tpu.memory_space<vmem>>, %arg3: memref<1x128xf32, #tpu.memory_space<vmem>>, %arg4: memref<128x128xbf16, #tpu.memory_space<vmem>>, %arg5: memref<1x128xf32, #tpu.memory_space<vmem>>, %arg6: memref<16x128xf32, #tpu.memory_space<vmem>>) attributes {dimension_semantics = [#tpu.dimension_semantics<parallel>], iteration_bounds = array<i64: 1>, scalar_prefetch = 0 : i64, scratch_operands = 0 : i64, tpu.core_type = #tpu.core_type<tc>, window_params = [{transform_indices = @transform_0, window_bounds = array<i64: 16, 128>}, {pipeline_mode = #tpu.pipeline_mode<synchronous>, transform_indices = @transform_1, window_bounds = array<i64: 128, 128>}, {pipeline_mode = #tpu.pipeline_mode<synchronous>, transform_indices = @transform_2, window_bounds = array<i64: 1, 128>}, {pipeline_mode = #tpu.pipeline_mode<synchronous>, transform_indices = @transform_3, window_bounds = array<i64: 128, 128>}, {pipeline_mode = #tpu.pipeline_mode<synchronous>, transform_indices = @transform_4, window_bounds = array<i64: 1, 128>}, {transform_indices = @transform_5, window_bounds = array<i64: 16, 128>}]} {
    %c0 = arith.constant 0 : index
    %c0_0 = arith.constant 0 : index
    %0 = vector.load %arg1[%c0, %c0_0] : memref<16x128xbf16, #tpu.memory_space<vmem>>, vector<16x128xbf16>
    %c0_1 = arith.constant 0 : index
    %c0_2 = arith.constant 0 : index
    %1 = vector.load %arg2[%c0_1, %c0_2] : memref<128x128xbf16, #tpu.memory_space<vmem>>, vector<128x128xbf16>
    %cst = arith.constant dense<0.000000e+00> : vector<16x128xf32>
    %2 = tpu.matmul %0, %1, %cst {dimension_numbers = #tpu.dot_dimension_numbers<[1], [0], [0], [1], [0, 0, 1, 1], [], []>} : vector<16x128xbf16>, vector<128x128xbf16>, vector<16x128xf32> -> vector<16x128xf32>
    %c0_3 = arith.constant 0 : index
    %c0_4 = arith.constant 0 : index
    %3 = vector.load %arg3[%c0_3, %c0_4] : memref<1x128xf32, #tpu.memory_space<vmem>>, vector<1x128xf32>
    %4 = vector.broadcast %3 : vector<1x128xf32> to vector<16x128xf32>
    %5 = arith.addf %2, %4 : vector<16x128xf32>
    %cst_5 = arith.constant 0.000000e+00 : f32
    %6 = vector.broadcast %cst_5 : f32 to vector<16x128xf32>
    %7 = arith.maximumf %5, %6 : vector<16x128xf32>
    %8 = arith.truncf %7 : vector<16x128xf32> to vector<16x128xbf16>
    %c0_6 = arith.constant 0 : index
    %c0_7 = arith.constant 0 : index
    %9 = vector.load %arg4[%c0_6, %c0_7] : memref<128x128xbf16, #tpu.memory_space<vmem>>, vector<128x128xbf16>
    %cst_8 = arith.constant dense<0.000000e+00> : vector<16x128xf32>
    %10 = tpu.matmul %8, %9, %cst_8 {dimension_numbers = #tpu.dot_dimension_numbers<[1], [0], [0], [1], [0, 0, 1, 1], [], []>} : vector<16x128xbf16>, vector<128x128xbf16>, vector<16x128xf32> -> vector<16x128xf32>
    %c0_9 = arith.constant 0 : index
    %c0_10 = arith.constant 0 : index
    %11 = vector.load %arg5[%c0_9, %c0_10] : memref<1x128xf32, #tpu.memory_space<vmem>>, vector<1x128xf32>
    %12 = vector.broadcast %11 : vector<1x128xf32> to vector<16x128xf32>
    %13 = arith.addf %10, %12 : vector<16x128xf32>
    %cst_11 = arith.constant dense<0xFF800000> : vector<16xf32>
    %14 = vector.multi_reduction <maximumf>, %13, %cst_11 [1] : vector<16x128xf32> to vector<16xf32>
    %15 = vector.shape_cast %14 : vector<16xf32> to vector<16x1xf32>
    %16 = vector.broadcast %15 : vector<16x1xf32> to vector<16x128xf32>
    %17 = arith.subf %13, %16 : vector<16x128xf32>
    %18 = math.exp %17 : vector<16x128xf32>
    %cst_12 = arith.constant dense<0.000000e+00> : vector<16xf32>
    %19 = vector.multi_reduction <add>, %18, %cst_12 [1] : vector<16x128xf32> to vector<16xf32>
    %20 = vector.shape_cast %19 : vector<16xf32> to vector<16x1xf32>
    %21 = tpu.reciprocal %20 {approx = true} : vector<16x1xf32> -> vector<16x1xf32>
    %22 = arith.mulf %20, %21 : vector<16x1xf32>
    %cst_13 = arith.constant 2.000000e+00 : f32
    %23 = vector.broadcast %cst_13 : f32 to vector<16x1xf32>
    %24 = arith.subf %23, %22 : vector<16x1xf32>
    %25 = arith.mulf %21, %24 : vector<16x1xf32>
    %26 = vector.broadcast %25 : vector<16x1xf32> to vector<16x128xf32>
    %27 = arith.mulf %18, %26 : vector<16x128xf32>
    %c0_14 = arith.constant 0 : index
    %c0_15 = arith.constant 0 : index
    %28 = vector.load %arg6[%c0_14, %c0_15] : memref<16x128xf32, #tpu.memory_space<vmem>>, vector<16x128xf32>
    tpu.vector_store %arg6[%c0_14, %c0_15], %27 {strides = array<i32>} : memref<16x128xf32, #tpu.memory_space<vmem>>, vector<16x128xf32>,
    return
  }
  func.func @transform_0(%arg0: i32) -> (i32, i32) {
    %c0_i32 = arith.constant 0 : i32
    %c0_i32_0 = arith.constant 0 : i32
    return %arg0, %c0_i32 : i32, i32
  }
  func.func @transform_1(%arg0: i32) -> (i32, i32) {
    %c0_i32 = arith.constant 0 : i32
    %c0_i32_0 = arith.constant 0 : i32
    %c0_i32_1 = arith.constant 0 : i32
    return %c0_i32, %c0_i32_0 : i32, i32
  }
  func.func @transform_2(%arg0: i32) -> (i32, i32) {
    %c0_i32 = arith.constant 0 : i32
    %c0_i32_0 = arith.constant 0 : i32
    %c0_i32_1 = arith.constant 0 : i32
    return %c0_i32, %c0_i32_0 : i32, i32
  }
  func.func @transform_3(%arg0: i32) -> (i32, i32) {
    %c0_i32 = arith.constant 0 : i32
    %c0_i32_0 = arith.constant 0 : i32
    %c0_i32_1 = arith.constant 0 : i32
    return %c0_i32, %c0_i32_0 : i32, i32
  }
  func.func @transform_4(%arg0: i32) -> (i32, i32) {
    %c0_i32 = arith.constant 0 : i32
    %c0_i32_0 = arith.constant 0 : i32
    %c0_i32_1 = arith.constant 0 : i32
    return %c0_i32, %c0_i32_0 : i32, i32
  }
  func.func @transform_5(%arg0: i32) -> (i32, i32) {
    %c0_i32 = arith.constant 0 : i32
    %c0_i32_0 = arith.constant 0 : i32
    return %arg0, %c0_i32 : i32, i32
  }
}

</mosaic_0001>

<bundles_post_ra>
// kernel: tpu_custom_call.1
= control target key start
LH: loop header
LB: loop body
LE: loop exit
PB: predicated region body
PF: predicated region fallthrough
CT: control target
= control target key end

     0   :  { %10 = vsyncpa [#allocation3], 0  ;;  %s658_s0 = inlined_call_operand.hbm [shape: bf16[16,128], index: 0, kind: input, shape index: {}]   ;;  %s659_s1 = inlined_call_operand.hbm [shape: bf16[128,128], index: 1, kind: input, shape index: {}]   ;;  %s660_s2 = inlined_call_operand.vmem [shape: f32[1,128], index: 2, kind: input, shape index: {}]   ;;  %s661_s3 = inlined_call_operand.hbm [shape: bf16[128,128], index: 3, kind: input, shape index: {}]   ;;  %s662_s4 = inlined_call_operand.vmem [shape: f32[1,128], index: 4, kind: input, shape index: {}]   ;;  %s663_s5 = inlined_call_operand.hbm [shape: f32[16,128], index: 5, kind: output, shape index: {}]  }
   0x1   :  { %11 = vsyncpa [#allocation6], 0 }
   0x2   :  { %12 = vsyncpa [#allocation4], 0  ;;  %s548_s18 = smov [#allocation5]   ;;  %s549_s20 = smov [#allocation2]  }
   0x3   :  { %s30_s19 = sshll.u32 %s548_s18, 4  ;;  %s18_s21 = sshll.u32 %s549_s20, 4  ;;  %s31_s19 = int_to_ptr.vmem [resolvable:$true] %s30_s19  ;;  %s588_s21 = int_to_ptr.vmem [resolvable:$true] %s18_s21 }
   0x4   :  { %s454_s24 = scalar_lea.hbm %s659_s1, 1024 }
   0x5   :  { %p455_p0 = scmp.ne.s32.totalorder %s659_s1, %s454_s24  ;;  %p458_p1 = scmp.lt.u32.totalorder %s454_s24, %s659_s1 }
   0x7   :  { %p460_p2 = pnand %p458_p1, %p455_p0 }
   0x9   :  { %463 = shalt.err (!%p460_p2)
}
   0xa   :  { %s464_s29 = scalar_lea.vmem %s31_s19, 1024  ;;  %p469_p4 = scmp.lt.s32.totalorder %s31_s19, %s31_s19 }
   0xb   :  { %p465_p3 = scmp.ne.s32.totalorder %s31_s19, %s464_s29  ;;  %p470_p5 = scmp.lt.s32.totalorder %s464_s29, %s464_s29 }
   0xd   :  { %p471_p6 = por %p470_p5, %p469_p4 }
   0xf   :  { %p472_p7 = pnand %p471_p6, %p465_p3 }
  0x11   :  { %475 = shalt.err (!%p472_p7)
}
  0x12   :  { %s550_s30 = smov 64   ;;  %s551_s6 = smov 4  }
  0x13   :  { %36 = dma.hbm_to_vmem [thread:$0]  %s659_s1, 1024, %s31_s19, [#allocation6], %s550_s30, %s550_s30, %s551_s6  }
  0x14   :  { %s476_s11 = scalar_lea.hbm %s658_s0, 128 }
  0x15   :  { %p477_p8 = scmp.ne.s32.totalorder %s658_s0, %s476_s11  ;;  %p480_p9 = scmp.lt.u32.totalorder %s476_s11, %s658_s0 }
  0x17   :  { %p482_p10 = pnand %p480_p9, %p477_p8 }
  0x19   :  { %485 = shalt.err (!%p482_p10)
}
  0x1a   :  { %s486_s16 = scalar_lea.vmem %s588_s21, 128  ;;  %p491_p12 = scmp.lt.s32.totalorder %s588_s21, %s588_s21 }
  0x1b   :  { %p487_p11 = scmp.ne.s32.totalorder %s588_s21, %s486_s16  ;;  %p492_p13 = scmp.lt.s32.totalorder %s486_s16, %s486_s16 }
  0x1d   :  { %p493_p0 = por %p492_p13, %p491_p12 }
  0x1f   :  { %p494_p1 = pnand %p493_p0, %p487_p11 }
  0x21   :  { %497 = shalt.err (!%p494_p1)
}
  0x22   :  { %24 = dma.hbm_to_vmem [thread:$0]  %s658_s0, 128, %s588_s21, [#allocation3], %s550_s30, %s550_s30, %s551_s6  }
  0x23   :  { %s552_s18 = smov [#allocation7]   ;;  %s498_s23 = scalar_lea.hbm %s661_s3, 1024 }
  0x24   :  { %s44_s19 = sshll.u32 %s552_s18, 4  ;;  %p499_p2 = scmp.ne.s32.totalorder %s661_s3, %s498_s23  ;;  %s45_s19 = int_to_ptr.vmem [resolvable:$true] %s44_s19 }
  0x25   :  { %p502_p3 = scmp.lt.u32.totalorder %s498_s23, %s661_s3 }
  0x27   :  { %p504_p4 = pnand %p502_p3, %p499_p2 }
  0x29   :  { %507 = shalt.err (!%p504_p4)
}
  0x2a   :  { %s508_s28 = scalar_lea.vmem %s45_s19, 1024  ;;  %p513_p6 = scmp.lt.s32.totalorder %s45_s19, %s45_s19 }
  0x2b   :  { %p509_p5 = scmp.ne.s32.totalorder %s45_s19, %s508_s28  ;;  %p514_p7 = scmp.lt.s32.totalorder %s508_s28, %s508_s28 }
  0x2d   :  { %p515_p8 = por %p514_p7, %p513_p6 }
  0x2f   :  { %p516_p9 = pnand %p515_p8, %p509_p5 }
  0x31   :  { %519 = shalt.err (!%p516_p9)
}
  0x32   :  { %50 = dma.hbm_to_vmem [thread:$0]  %s661_s3, 1024, %s45_s19, [#allocation6], %s550_s30, %s550_s30, %s551_s6  }
  0x33   :  { %542 = dma.done.wait [#allocation3], 128  }
  0x34   :  { %543 = vsyncadd [#allocation3], 4294967168 }
  0x35   :  { %544 = dma.done.wait [#allocation6], 2048  }
  0x36   :  { %545 = vsyncadd [#allocation6], 4294965248  ;;  %v553_v0 = vmov 0.0   ;;  %vm554_vm0 = vmmov 0   ;;  %v429_v1 = vld [vmem:[#allocation5] sm:$0xff]   ;;  %v430_v2 = vld [vmem:[#allocation5 + $0x8] sm:$0xff]  }
  0x37   :  { %379 = vmatprep.subr.bf16.mxu0 %v553_v0  ;;  %395 = vmatprep.mubr.msk.bf16.mxu0 %vm554_vm0, %v553_v0  ;;  %v431_v3 = vld [vmem:[#allocation5 + $0x10] sm:$0xff]   ;;  %v438_v4 = vld [vmem:[#allocation7] sm:$0xff]   ;;  %v432_v5 = vld [vmem:[#allocation5 + $0x18] sm:$0xff]  }
  0x38   :  { %399 = vmatprep.subr.bf16.mxu1 %v553_v0  ;;  %415 = vmatprep.mubr.msk.bf16.mxu1 %vm554_vm0, %v553_v0  ;;  %v439_v6 = vld [vmem:[#allocation7 + $0x8] sm:$0xff]   ;;  %v433_v7 = vld [vmem:[#allocation5 + $0x20] sm:$0xff]   ;;  %v440_v8 = vld [vmem:[#allocation7 + $0x10] sm:$0xff]  }
  0x39   :  { %380 = vmatpush3.bf16.msra.mxu0 %v429_v1  ;;  %400 = vmatpush3.bf16.msra.mxu1 %v438_v4  ;;  %v434_v9 = vld [vmem:[#allocation5 + $0x28] sm:$0xff]   ;;  %v441_v10 = vld [vmem:[#allocation7 + $0x18] sm:$0xff]   ;;  %v435_v11 = vld [vmem:[#allocation5 + $0x30] sm:$0xff]  }
  0x3a   :  { %381 = vmatprep.subr.bf16.mxu0 %v553_v0  ;;  %401 = vmatprep.subr.bf16.mxu1 %v553_v0  ;;  %v442_v12 = vld [vmem:[#allocation7 + $0x20] sm:$0xff]   ;;  %v436_v13 = vld [vmem:[#allocation5 + $0x38] sm:$0xff]   ;;  %v443_v14 = vld [vmem:[#allocation7 + $0x28] sm:$0xff]  }
  0x3b   :  { %v437_v15 = vld [vmem:[#allocation2] sm:$0xff]   ;;  %v444_v16 = vld [vmem:[#allocation7 + $0x30] sm:$0xff]  }
  0x3c   :  { %v445_v17 = vld [vmem:[#allocation7 + $0x38] sm:$0xff]  }
  0x3d   :  { %382 = vmatpush3.bf16.msra.mxu0 %v430_v2  ;;  %402 = vmatpush3.bf16.msra.mxu1 %v439_v6  ;;  %v342_v18 = vld [vmem:[%s660_s2] ss:$0 sm:$0xff]  ;;  %s555_s2 = smov [#allocation8]  }
  0x3e   :  { %383 = vmatprep.subr.bf16.mxu0 %v553_v0  ;;  %403 = vmatprep.subr.bf16.mxu1 %v553_v0  ;;  %v352_v28 = vld [vmem:[%s662_s4] ss:$0 sm:$0xff]  ;;  %s329_s4 = sshll.u32 %s555_s2, 4  ;;  %s330_s4 = int_to_ptr.vmem [resolvable:$true] %s329_s4 }
  0x3f   :  { %s520_s7 = scalar_lea.vmem %s330_s4, 256  ;;  %p525_p11 = scmp.lt.s32.totalorder %s330_s4, %s330_s4 }
  0x40   :  { %p521_p10 = scmp.ne.s32.totalorder %s330_s4, %s520_s7  ;;  %p526_p12 = scmp.lt.s32.totalorder %s520_s7, %s520_s7 }
  0x41   :  { %384 = vmatpush3.bf16.msra.mxu0 %v431_v3  ;;  %404 = vmatpush3.bf16.msra.mxu1 %v440_v8 }
  0x42   :  { %385 = vmatprep.subr.bf16.mxu0 %v553_v0  ;;  %405 = vmatprep.subr.bf16.mxu1 %v553_v0  ;;  %p527_p13 = por %p526_p12, %p525_p11 }
  0x44   :  { %p528_p0 = pnand %p527_p13, %p521_p10 }
  0x45   :  { %386 = vmatpush3.bf16.msra.mxu0 %v432_v5  ;;  %406 = vmatpush3.bf16.msra.mxu1 %v441_v10 }
  0x46   :  { %387 = vmatprep.subr.bf16.mxu0 %v553_v0  ;;  %407 = vmatprep.subr.bf16.mxu1 %v553_v0 }
  0x49   :  { %388 = vmatpush3.bf16.msra.mxu0 %v433_v7  ;;  %408 = vmatpush3.bf16.msra.mxu1 %v442_v12 }
  0x4a   :  { %389 = vmatprep.subr.bf16.mxu0 %v553_v0  ;;  %409 = vmatprep.subr.bf16.mxu1 %v553_v0 }
  0x4d   :  { %390 = vmatpush3.bf16.msra.mxu0 %v434_v9  ;;  %410 = vmatpush3.bf16.msra.mxu1 %v443_v14 }
  0x4e   :  { %391 = vmatprep.subr.bf16.mxu0 %v553_v0  ;;  %411 = vmatprep.subr.bf16.mxu1 %v553_v0 }
  0x51   :  { %392 = vmatpush3.bf16.msra.mxu0 %v435_v11  ;;  %412 = vmatpush3.bf16.msra.mxu1 %v444_v16 }
  0x52   :  { %393 = vmatprep.subr.bf16.mxu0 %v553_v0  ;;  %413 = vmatprep.subr.bf16.mxu1 %v553_v0 }
  0x55   :  { %394 = vmatpush3.bf16.msra.mxu0 %v436_v13  ;;  %414 = vmatpush3.bf16.msra.mxu1 %v445_v17 }
  0x58   :  { %396 = vmatmul.mubr.bf16.vlgmr.msra.gmra.mrb[0].mxu0 %v437_v15 }
 0x12b   :  { %v176_v19 = vpop.f32.mrb[0].mxu0 }
 0x12c   :  { %v177_v20 = vadd.f32 %v342_v18, %v176_v19  ;;  %v397_v21 = vpop.f32.mrb[1].mxu0 }
 0x12d   :  { %v179_v22 = vpop.f32.mrb[2].mxu0 }
 0x12e   :  { %v180_v23 = vadd.f32 %v342_v18, %v179_v22  ;;  %v398_v24 = vpop.f32.mrb[3].mxu0  ;;  %v183_v25 = vmax.f32 %v177_v20, 0.0 }
 0x130   :  { %v184_v26 = vmax.f32 %v180_v23, 0.0 }
 0x132   :  { %v185_v27 = vpack.c.bf16 %v184_v26, %v183_v25 }
 0x134   :  { %416 = vmatmul.mubr.bf16.vlgmr.msra.gmra.mrb[0].mxu1 %v185_v27 }
 0x207   :  { %v291_v29 = vpop.f32.mrb[0].mxu1 }
 0x208   :  { %v292_v30 = vadd.f32 %v352_v28, %v291_v29  ;;  %v417_v31 = vpop.f32.mrb[1].mxu1 }
 0x209   :  { %v294_v32 = vpop.f32.mrb[2].mxu1 }
 0x20a   :  { %298 = vmax.xlane.f32.xlu0 %v292_v30  ;;  %v418_v33 = vpop.f32.mrb[3].mxu1  ;;  %v295_v34 = vadd.f32 %v352_v28, %v294_v32 }
 0x20e   :  { %300 = vmax.xlane.f32.xlu0 %v295_v34 }
 0x297   :  { %v299_v35 = vpop.xlane.xlu0 %298 }
 0x298   :  { %v302_v36 = vsub.f32 %v292_v30, %v299_v35 }
 0x29a   :  { %v304_v37 = vmul.f32 1.442695, %v302_v36 }
 0x29b   :  { %v301_v38 = vpop.xlane.xlu0 %300 }
 0x29c   :  { %446 = vpow2.f32 %v304_v37  ;;  %v303_v39 = vsub.f32 %v295_v34, %v301_v38 }
 0x29e   :  { %v306_v40 = vmul.f32 1.442695, %v303_v39 }
 0x2a0   :  { %448 = vpow2.f32 %v306_v40 }
 0x2a6   :  { %v447_v41 = vpop.eup %446 }
 0x2a7   :  { %308 = vadd.xlane.f32.xlu1 %v447_v41 }
 0x2aa   :  { %v449_v42 = vpop.eup %448 }
 0x2ab   :  { %310 = vadd.xlane.f32.xlu1 %v449_v42 }
 0x334   :  { %v309_v43 = vpop.xlane.xlu1 %308 }
 0x335   :  { %450 = vrcp.f32 %v309_v43 }
 0x338   :  { %v311_v44 = vpop.xlane.xlu1 %310 }
 0x339   :  { %452 = vrcp.f32 %v311_v44 }
 0x33f   :  { %v451_v45 = vpop.eup %450 }
 0x340   :  { %v314_v46 = vmul.f32 %v451_v45, %v309_v43 }
 0x342   :  { %v316_v47 = vsub.f32 2.0, %v314_v46 }
 0x343   :  { %v453_v48 = vpop.eup %452 }
 0x344   :  { %v318_v49 = vmul.f32 %v451_v45, %v316_v47  ;;  %v315_v50 = vmul.f32 %v453_v48, %v311_v44 }
 0x346   :  { %v320_v51 = vmul.f32 %v447_v41, %v318_v49  ;;  %v317_v52 = vsub.f32 2.0, %v315_v50 }
 0x348   :  { %322 = vst [vmem:[#allocation8] sm:$0xff] %v320_v51  ;;  %v319_v53 = vmul.f32 %v453_v48, %v317_v52 }
 0x34a   :  { %v321_v54 = vmul.f32 %v449_v42, %v319_v53 }
 0x34c   :  { %323 = vst [vmem:[#allocation8 + $0x8] sm:$0xff] %v321_v54 }
 0x34d   :  { %531 = shalt.err (!%p528_p0)
}
 0x34e   :  { %s532_s10 = scalar_lea.hbm %s663_s5, 256 }
 0x34f   :  { %p533_p1 = scmp.ne.s32.totalorder %s663_s5, %s532_s10  ;;  %p536_p2 = scmp.lt.u32.totalorder %s532_s10, %s663_s5 }
 0x351   :  { %p538_p3 = pnand %p536_p2, %p533_p1 }
 0x353   :  { %541 = shalt.err (!%p538_p3)
}
 0x354   :  { %s556_s15 = smov 128   ;;  %s557_s16 = smov 8  }
 0x355   :  { %335 = dma.vmem_to_hbm [thread:$0]  %s330_s4, 256, %s663_s5, [#allocation4], %s556_s15, %s556_s15, %s557_s16  }
 0x356   :  { %546 = dma.done.wait [#allocation4], 256  }
 0x357   :  { %547 = vsyncadd [#allocation4], 4294967040 }
 0x358   :  { %339 = vsyncpa [#allocation3], 1 }
 0x359   :  { %340 = vsyncpa [#allocation6], 1 }
 0x35a   :  { %341 = vsyncpa [#allocation4], 1 }

</bundles_post_ra>
